<compile_context>
chip_gen: v7x
topology: tpu7x:2x2x1
jax: 0.10.0
libtpu: 0.0.40
codegen_flags: <defaults>
</compile_context>

<pallas_src>
import jax
import jax.numpy as jnp
from jax.experimental import pallas as pl
from jax.experimental.pallas import tpu as pltpu


def _splat_kernel(val_ref, o_ref):
    # val_ref: SMEM, shape (1,), float32 -- precomputed exp(-variance).
    # o_ref:   VMEM, shape (block_rows, 128), float32 -- lane-dense output tile.
    o_ref[...] = jnp.full(o_ref.shape, val_ref[0], o_ref.dtype)


# Below this many output elements, pallas launch overhead dominates; use a
# native broadcast instead.  256 rows * 128 lanes = 32768 elements = 128 KiB.
_SMALL_N = 256 * 128
# Max rows per output block: 2048 * 128 * 4 B = 1 MiB per block.
_MAX_BLOCK_ROWS = 2048


def depth_variance_forward(x, variance):
    """Equivalent of DepthVarianceNetwork.forward(x).

    Args:
      x: any array whose leading dim is the batch size.
      variance: scalar parameter (python float or 0-d array).

    Returns:
      (N, 1) float32 array filled with exp(-variance).
    """
    n = x.shape[0]
    # Hoisted scalar transcendental: one exp in plain JAX, kernel only splats.
    val = jnp.exp(-jnp.asarray(variance, dtype=jnp.float32))

    # ---- small-batch fast path: no Pallas launch -------------------------
    if n <= _SMALL_N:
        return jnp.full((n, 1), val, dtype=jnp.float32)

    # ---- large-N Pallas path: lane-dense slab, full blocks only ----------
    rows_needed = pl.cdiv(n, 128)
    # Multiple of 8 sublanes; capped at rows_needed//2 so the parallel grid
    # always has >= 2 blocks (both TensorCores active on v7x).
    block_rows = min(_MAX_BLOCK_ROWS, max(8, (rows_needed // 2) & ~7))
    # Pad rows to a whole number of blocks so the last block is never ragged.
    num_blocks = pl.cdiv(rows_needed, block_rows)
    rows = num_blocks * block_rows
    n_pad = rows * 128

    out = pl.pallas_call(
        _splat_kernel,
        out_shape=jax.ShapeDtypeStruct((rows, 128), jnp.float32),
        grid=(num_blocks,),
        in_specs=[pl.BlockSpec(memory_space=pltpu.MemorySpace.SMEM)],
        out_specs=pl.BlockSpec(
            (block_rows, 128),
            lambda i: (i, 0),
            memory_space=pltpu.MemorySpace.VMEM,
        ),
        compiler_params=pltpu.CompilerParams(
            dimension_semantics=("parallel",),
        ),
        cost_estimate=pl.CostEstimate(
            flops=0, transcendentals=0, bytes_accessed=n_pad * 4
        ),
    )(val.reshape((1,)))

    slab = out.reshape(n_pad, 1)
    if n == n_pad:
        return slab
    return slab[:n]


if __name__ == "__main__":
    key = jax.random.PRNGKey(0)

    # Deterministic "parameter" (the module's __init__(init_val)).
    init_val = 0.3
    variance = jnp.float32(init_val)
    expected = jnp.exp(-variance)

    # Small example input (NeRF-style NCHW); only len(x) is consumed.
    x = jax.random.normal(key, (2, 4, 16, 16), dtype=jnp.float32)
    out = jax.block_until_ready(depth_variance_forward(x, variance))
    ref = jnp.ones((x.shape[0], 1), dtype=jnp.float32) * expected
    assert out.shape == (x.shape[0], 1), out.shape
    assert out.dtype == jnp.float32, out.dtype
    assert jnp.allclose(out, ref, rtol=1e-6, atol=1e-6), (out, ref)

    # Large, non-block-aligned batch: exercises the Pallas path with a
    # padded slab and the trailing slice.
    x_big = jnp.zeros((50000, 3), dtype=jnp.float32)
    out_big = jax.block_until_ready(depth_variance_forward(x_big, variance))
    assert out_big.shape == (50000, 1), out_big.shape
    assert jnp.allclose(out_big, expected, rtol=1e-6, atol=1e-6), out_big[:4]

    # Large, exactly block-aligned batch: exercises the >=2-parallel-block
    # path (both TCs on v7x) and the no-slice return.
    x_aligned = jnp.zeros((262144, 3), dtype=jnp.float32)
    out_al = jax.block_until_ready(depth_variance_forward(x_aligned, variance))
    assert out_al.shape == (262144, 1), out_al.shape
    assert jnp.allclose(out_al, expected, rtol=1e-6, atol=1e-6), out_al[:4]

    print("KERNEL_OK")
</pallas_src>

<mosaic_0001>
module attributes {stable_mosaic.version = 11 : i64} {
  func.func @_splat_kernel(%arg0: i32, %arg1: memref<1xf32, #tpu.memory_space<smem>>, %arg2: memref<192x128xf32, #tpu.memory_space<vmem>>) attributes {dimension_semantics = [#tpu.dimension_semantics<parallel>], iteration_bounds = array<i64: 3>, scalar_prefetch = 0 : i64, scratch_operands = 0 : i64, tpu.core_type = #tpu.core_type<tc>, window_params = [{transform_indices = @transform_0, window_bounds = array<i64: 1>}, {transform_indices = @transform_1, window_bounds = array<i64: 192, 128>}]} {
    %c0 = arith.constant 0 : index
    %0 = memref.load %arg1[%c0] : memref<1xf32, #tpu.memory_space<smem>>
    %1 = vector.broadcast %0 : f32 to vector<192x128xf32>
    %c0_0 = arith.constant 0 : index
    %c0_1 = arith.constant 0 : index
    %2 = vector.load %arg2[%c0_0, %c0_1] : memref<192x128xf32, #tpu.memory_space<vmem>>, vector<192x128xf32>
    tpu.vector_store %arg2[%c0_0, %c0_1], %1 {strides = array<i32>} : memref<192x128xf32, #tpu.memory_space<vmem>>, vector<192x128xf32>,
    return
  }
  func.func @transform_0(%arg0: i32) -> i32 {
    %c0_i32 = arith.constant 0 : i32
    %c0_i32_0 = arith.constant 0 : i32
    return %c0_i32 : i32
  }
  func.func @transform_1(%arg0: i32) -> (i32, i32) {
    %c0_i32 = arith.constant 0 : i32
    %c0_i32_0 = arith.constant 0 : i32
    return %arg0, %c0_i32 : i32, i32
  }
}

</mosaic_0001>

<bundles_post_ra>
// kernel: tpu_custom_call.1
= control target key start
LH: loop header
LB: loop body
LE: loop exit
PB: predicated region body
PF: predicated region fallthrough
CT: control target
= control target key end

     0   :  { %s414_s0 = inlined_call_operand.<no memory space> [shape: f32[1], index: 0, kind: input, shape index: {}]   ;;  %s415_s1 = inlined_call_operand.hbm [shape: f32[576,128], index: 1, kind: output, shape index: {}]  }
   0x1   :  { %6 = sst [smem:[#allocation2]] %s414_s0 }
   0x2   :  { %7 = vsyncpa [#allocation4], 0 }
   0x3   :  { %9 = vsyncpa [#allocation4 + $0x1], 0  ;;  %s316_s8 = smov 0   ;;  %s318_s9 = smov 0  }
   0x4   :  { %s320_s10 = smov 0   ;;  %s322_s11 = smov 0  }
   0x5 LB: > { %s186_s0 = sadd.s32 4294967295, %s298_s11   ;;  %s187_s12 = sadd.s32 4294967294, %s298_s11   ;;  %s298_s11 = sphi %s322_s11, %s421_s11   ;;  %s294_s10 = sphi %s320_s10, %s420_s10   ;;  %s290_s9 = sphi %s318_s9, %s419_s9   ;;  %s286_s8 = sphi %s316_s8, %s418_s8  }
   0x6   : > { %s339_s13 = sadd.s32 1, %s298_s11   ;;  %s43_s14 = sadd.s32 1, %s294_s10 }
   0x7   : > { %s40_s15 = ssub.s32 %s298_s11, %s339_s13  ;;  %p53_p0 = scmp.ne.s32.totalorder %s294_s10, %s290_s9 }
   0x8   : > { %p41_p1 = scmp.eq.s32.totalorder %s40_s15, 0  ;;  %p54_p2 = scmp.eq.s32.totalorder %s186_s0, 2 }
   0x9   : > { %p59_p3 = scmp.ne.s32.totalorder %s290_s9, %s286_s8  ;;  %p60_p4 = scmp.eq.s32.totalorder %s187_s12, 2 }
   0xa   : > { %s349_s16 = scalar_select %p41_p1, %s294_s10, %s43_s14  }
   0xb   : > { %p351_p5 = por %p54_p2, %p53_p0  ;;  %p355_p6 = por %p60_p4, %p59_p3 }
   0xc   : > { %p189_p7 = scmp.ge.s32.totalorder %s298_s11, 1  ;;  %p81_p8 = scmp.lt.s32.totalorder %s298_s11, 4 }
   0xe   : > { %p82_p9 = pnand %p189_p7, %p81_p8 }
   0xf   : > { %s93_s19 = sand.u32 (!%p82_p9), 1, %s290_s9   ;;  %s97_s20 = sld [smem:[#allocation2]] (!%p82_p9) }
  0x10   : > { %85 = sbr.rel (%p82_p9) target bundleno = 48 (0x30), region = 24  ;;  %s373_s28 = scalar_lea.sflag (!%p82_p9), [#allocation4], %s93_s19 }
  0x11   : > { %s194_s21 = smul.u32 (!%p82_p9), 192, %s93_s19  ;;  %s300_s30 = smov (!%p82_p9), [#allocation3]  }
  0x12   : > { %s193_s22 = smul.u32 (!%p82_p9), 3072, %s186_s0  ;;  %s240_s2 = sshll.u32 (!%p82_p9), %s300_s30, 4  ;;  %s241_s2 = int_to_ptr.vmem [resolvable:$false] %s240_s2 }
  0x13   : > { %s95_s23 = scalar_lea.vmem (!%p82_p9), [#allocation3], %s194_s21  ;;  %s242_s3 = scalar_lea.vmem (!%p82_p9), %s241_s2, 6144 }
  0x14   : > { %s137_s24 = sshll.u32 (!%p82_p9), %s95_s23, 4  ;;  %s367_s27 = scalar_lea.hbm (!%p82_p9), %s415_s1, %s193_s22  ;;  %s369_s24 = int_to_ptr.vmem [resolvable:$true] %s137_s24 }
  0x15   : > { %v98_v0 = vstv (!%p82_p9), %s97_s20  ;;  %s236_s29 = scalar_lea.vmem (!%p82_p9), %s369_s24, 3072  ;;  %p243_p13 = scmp.lt.s32.totalorder (!%p82_p9), %s369_s24, %s241_s2 }
  0x16   : > { %99 = vst [vmem:[%s95_s23] sm:$0xff] (!%p82_p9), %v98_v0  ;;  %100 = vst [vmem:[%s95_s23 + $0x8] sm:$0xff] (!%p82_p9), %v98_v0  ;;  %p237_p10 = scmp.ne.s32.totalorder (!%p82_p9), %s369_s24, %s236_s29  ;;  %p244_p0 = scmp.lt.s32.totalorder (!%p82_p9), %s242_s3, %s236_s29 }
  0x17   : > { %101 = vst [vmem:[%s95_s23 + $0x10] sm:$0xff] %v98_v0  ;;  %102 = vst [vmem:[%s95_s23 + $0x18] sm:$0xff] %v98_v0 }
  0x18   : > { %103 = vst [vmem:[%s95_s23 + $0x20] sm:$0xff] %v98_v0  ;;  %104 = vst [vmem:[%s95_s23 + $0x28] sm:$0xff] %v98_v0  ;;  %p238_p11 = pnand %p237_p10, %p351_p5  ;;  %p245_p1 = por %p244_p0, %p243_p13 }
  0x19   : > { %105 = vst [vmem:[%s95_s23 + $0x30] sm:$0xff] %v98_v0  ;;  %106 = vst [vmem:[%s95_s23 + $0x38] sm:$0xff] %v98_v0 }
  0x1a   : > { %107 = vst [vmem:[%s95_s23 + $0x40] sm:$0xff] %v98_v0  ;;  %108 = vst [vmem:[%s95_s23 + $0x48] sm:$0xff] %v98_v0  ;;  %p239_p12 = pneg %p238_p11 }
  0x1b   : > { %109 = vst [vmem:[%s95_s23 + $0x50] sm:$0xff] %v98_v0  ;;  %110 = vst [vmem:[%s95_s23 + $0x58] sm:$0xff] %v98_v0 }
  0x1c   : > { %111 = vst [vmem:[%s95_s23 + $0x60] sm:$0xff] %v98_v0  ;;  %112 = vst [vmem:[%s95_s23 + $0x68] sm:$0xff] %v98_v0  ;;  %p246_p2 = pnand %p245_p1, %p239_p12 }
  0x1d   : > { %113 = vst [vmem:[%s95_s23 + $0x70] sm:$0xff] %v98_v0  ;;  %114 = vst [vmem:[%s95_s23 + $0x78] sm:$0xff] %v98_v0 }
  0x1e   : > { %115 = vst [vmem:[%s95_s23 + $0x80] sm:$0xff] %v98_v0  ;;  %116 = vst [vmem:[%s95_s23 + $0x88] sm:$0xff] %v98_v0 }
  0x1f   : > { %117 = vst [vmem:[%s95_s23 + $0x90] sm:$0xff] %v98_v0  ;;  %118 = vst [vmem:[%s95_s23 + $0x98] sm:$0xff] %v98_v0 }
  0x20   : > { %119 = vst [vmem:[%s95_s23 + $0xa0] sm:$0xff] %v98_v0  ;;  %120 = vst [vmem:[%s95_s23 + $0xa8] sm:$0xff] %v98_v0 }
  0x21   : > { %121 = vst [vmem:[%s95_s23 + $0xb0] sm:$0xff] %v98_v0  ;;  %122 = vst [vmem:[%s95_s23 + $0xb8] sm:$0xff] %v98_v0 }
  0x22   : > { %249 = shalt.err (!%p246_p2)
}
  0x23   : > { %s250_s4 = scalar_lea.hbm %s367_s27, 3072  ;;  %s254_s7 = scalar_lea.hbm %s415_s1, 9216 }
  0x24   : > { %p251_p3 = scmp.ne.s32.totalorder %s367_s27, %s250_s4  ;;  %p255_p8 = scmp.lt.u32.totalorder %s367_s27, %s415_s1 }
  0x25   : > { %p256_p9 = scmp.lt.u32.totalorder %s254_s7, %s250_s4  ;;  %p258_p11 = scmp.lt.u32.totalorder %s250_s4, %s367_s27 }
  0x26   : > { %p252_p4 = pnand %p251_p3, %p351_p5 }
  0x27   : > { %p257_p10 = por %p256_p9, %p255_p8 }
  0x28   : > { %p253_p7 = pneg %p252_p4 }
  0x29   : > { %p259_p12 = por %p258_p11, %p257_p10 }
  0x2b   : > { %p260_p13 = pnand %p259_p12, %p253_p7 }
  0x2d   : > { %263 = shalt.err (!%p260_p13)
}
  0x2e   : > { %s301_s14 = smov 128   ;;  %s302_s15 = smov 8  }
  0x2f   : > { %195 = dma.vmem_to_hbm [thread:$0]  (%p351_p5), %s369_s24, 3072, %s367_s27, %s373_s28, %s301_s14, %s301_s14, %s302_s15  }
  0x30 PF: > { %p201_p0 = scmp.ge.s32.totalorder %s298_s11, 2  ;;  %s152_s19 = sand.u32 1, %s286_s8  }
  0x31   : > { %s153_s20 = scalar_lea.sflag [#allocation4], %s152_s19 }
  0x32   : > { %p198_p1 = pnand %p201_p0, %p355_p6 }
  0x34   : > { %281 = dma.done.wait (!%p198_p1), %s153_s20, 3072  }
  0x35   : > { %283 = vsyncadd (!%p198_p1), %s153_s20, 4294964224  ;;  %p12_p2 = scmp.ge.s32.totalorder %s339_s13, 5   ;;  %s418_s8 = smov %s290_s9 }
  0x36   : > { %s419_s9 = smov %s294_s10  ;;  %s420_s10 = smov %s349_s16 }
  0x37   : > { %s421_s11 = smov %s339_s13  ;;  %14 = sbr.rel (!%p12_p2) target bundleno = 5 (0x5), region = 56 }
  0x3e   :  { %158 = vsyncpa [#allocation4], 1 }
  0x3f   :  { %160 = vsyncpa [#allocation4 + $0x1], 1 }

</bundles_post_ra>
